<compile_context>
chip_gen: v5e
topology: v5e:2x2
jax: 0.10.0
libtpu: 0.0.40
codegen_flags: <defaults>
</compile_context>

<pallas_src>
import jax
import jax.numpy as jnp
from jax.experimental import pallas as pl
from jax.experimental.pallas import tpu as pltpu


def _nonlocal_kernel(xf_ref, xt_ref, m_ref, a_ref, wv_ref, bv_ref, o_ref):
    x_full = xf_ref[0]          # (C, N)   keys / values source (resident per batch)
    x_tile = xt_ref[0]          # (C, TQ)  queries of this tile (+ residual add)

    # z[:, i] = M x_i + a  with  M = Wk^T Wq,  a = Wk^T bq  (f32, tiny matmul).
    z = jnp.dot(m_ref[...], x_tile, preferred_element_type=jnp.float32) + a_ref[...]

    # energy_t[j, i] = k_j . q_i  up to softmax-invariant (query-only / const)
    # bias terms; contraction depth C instead of Ci keeps the MXU filled.
    # bf16 operands, f32 accumulation.
    xb = x_full.astype(jnp.bfloat16)
    e = jax.lax.dot_general(
        xb, z.astype(jnp.bfloat16),
        (((0,), (0,)), ((), ())),
        preferred_element_type=jnp.float32)                        # (N, TQ)

    # Numerically-stable softmax over keys (axis 0); normalization deferred
    # until after the attention matmul.
    m = jnp.max(e, axis=0, keepdims=True)                          # (1, TQ)
    p = jnp.exp(e - m)                                             # (N, TQ) f32 exp
    s = jnp.sum(p, axis=0, keepdims=True)                          # (1, TQ)

    # Deferred value projection: t = X p  (bf16 MXU), then
    # out = Wv_g (t / s) + bv_g + x_tile   (sum_j p[j,i]/s[i] == 1 exactly).
    t = jnp.dot(xb, p.astype(jnp.bfloat16),
                preferred_element_type=jnp.float32)                # (C, TQ)

    inv_s = pl.reciprocal(s, approx=True)                          # EUP vrcp
    attn_out = jnp.dot(wv_ref[...], t * inv_s,
                       preferred_element_type=jnp.float32)         # (C, TQ)
    o_ref[0] = (attn_out + bv_ref[...] + x_tile).astype(o_ref.dtype)


def _pick_tq(n):
    # Prefer 256-512 wide query tiles (per-step temporaries ~ 12*N*TQ bytes must
    # stay well inside the v7x 64 MiB VMEM); at small N prefer >= 2 tiles so the
    # grid has enough parallel steps for the megacore.
    for tq in (512, 256, 128):
        if n % tq == 0 and n // tq >= 2:
            return tq
    for tq in (512, 256, 128):
        if n % tq == 0:
            return tq
    return n   # non-128-multiple N: full-extent block (masked stores, perf only)


def nonlocal_block(x_nchw, wq, bq, wk, bk, wv, bv, gamma):
    """x_nchw: (B, C, H, W) float32. Returns (B, C, H, W)."""
    B, C, H, W = x_nchw.shape
    N = H * W
    TQ = _pick_tq(N)
    NQ = N // TQ
    g = gamma.reshape(())
    hp = jax.lax.Precision.HIGHEST

    # Host-side weight preparation (exact, f32):
    #   M = Wk^T Wq raises the energy contraction depth from Ci to C;
    #   a = Wk^T bq is the only softmax-relevant bias term (key-dependent);
    #   gamma folded into the value weights: gamma*(Wv x + bv) = Wv_g x + bv_g.
    M = jnp.dot(wk.T, wq, precision=hp)                 # (C, C)
    a_col = jnp.dot(wk.T, bq, precision=hp)[:, None]    # (C, 1)
    wv_g = g * wv                                       # (C, C)
    bv_col = (g * bv)[:, None]                          # (C, 1)

    # NCHW -> (B, C, N) is a free reshape (channels on sublanes, pixels on lanes).
    x_flat = x_nchw.reshape(B, C, N)

    out_flat = pl.pallas_call(
        _nonlocal_kernel,
        out_shape=jax.ShapeDtypeStruct((B, C, N), x_flat.dtype),
        grid_spec=pltpu.PrefetchScalarGridSpec(
            num_scalar_prefetch=0,
            grid=(B, NQ),
            in_specs=[
                # full x for the key/value side: constant across the query axis,
                # so it stays resident in VMEM per batch element.
                pl.BlockSpec((1, C, N), lambda b, qi: (b, 0, 0)),
                # query tile of the same array.
                pl.BlockSpec((1, C, TQ), lambda b, qi: (b, 0, qi)),
                pl.BlockSpec((C, C), lambda b, qi: (0, 0)),   # M = Wk^T Wq
                pl.BlockSpec((C, 1), lambda b, qi: (0, 0)),   # a = Wk^T bq
                pl.BlockSpec((C, C), lambda b, qi: (0, 0)),   # gamma * Wv
                pl.BlockSpec((C, 1), lambda b, qi: (0, 0)),   # gamma * bv
            ],
            out_specs=pl.BlockSpec((1, C, TQ), lambda b, qi: (b, 0, qi)),
        ),
        compiler_params=pltpu.CompilerParams(
            dimension_semantics=("parallel", "parallel"),
            # Budgeted against v7x's 64 MiB physical VMEM (TQ choice keeps the
            # (N, TQ) temporaries well under this even for large N).
            vmem_limit_bytes=48 * 1024 * 1024,
        ),
    )(x_flat, x_flat, M, a_col, wv_g, bv_col)

    # (B, C, N) -> NCHW is again a free reshape.
    return out_flat.reshape(B, C, H, W)


def _reference(x_nchw, wq, bq, wk, bk, wv, bv, gamma):
    """Pure-JAX reference mirroring the PyTorch forward exactly (f32)."""
    B, C, H, W = x_nchw.shape
    N = H * W
    hp = jax.lax.Precision.HIGHEST
    conv1x1 = lambda x, w, b: (jnp.einsum('bchw,oc->bohw', x, w, precision=hp)
                               + b[None, :, None, None])
    q = conv1x1(x_nchw, wq, bq).reshape(B, -1, N).transpose(0, 2, 1)  # (B, N, Ci)
    k = conv1x1(x_nchw, wk, bk).reshape(B, -1, N)                     # (B, Ci, N)
    v = conv1x1(x_nchw, wv, bv).reshape(B, -1, N)                     # (B, C, N)
    energy = jnp.einsum('bnc,bcm->bnm', q, k, precision=hp)
    attn = jax.nn.softmax(energy, axis=-1)
    out = jnp.einsum('bcm,bnm->bcn', v, attn, precision=hp).reshape(B, C, H, W)
    return gamma.reshape(()) * out + x_nchw


if __name__ == "__main__":
    key = jax.random.PRNGKey(0)
    # planes=16, reduce_ratio=8 -> inter_planes=2;  H=W=16 -> N=256 (lane-dense)
    B, C, H, W = 2, 16, 16, 16
    Ci = C // 8

    ks = jax.random.split(key, 8)
    x = jax.random.normal(ks[0], (B, C, H, W), dtype=jnp.float32)

    # Deterministic synthetic parameters.  DOConv2d with kernel_size=1 collapses
    # (at inference) to an ordinary 1x1 conv with a composed effective weight of
    # shape (out, in); we initialize that effective weight + bias directly.
    wq = 0.1 * jax.random.normal(ks[1], (Ci, C), dtype=jnp.float32)
    bq = 0.1 * jax.random.normal(ks[2], (Ci,), dtype=jnp.float32)
    wk = 0.1 * jax.random.normal(ks[3], (Ci, C), dtype=jnp.float32)
    bk = 0.1 * jax.random.normal(ks[4], (Ci,), dtype=jnp.float32)
    wv = 0.1 * jax.random.normal(ks[5], (C, C), dtype=jnp.float32)
    bv = 0.1 * jax.random.normal(ks[6], (C,), dtype=jnp.float32)
    # nn.Parameter(torch.zeros(1)) in __init__; set nonzero so the attention
    # path is actually exercised in the output.
    gamma = jnp.array([0.5], dtype=jnp.float32)

    out = nonlocal_block(x, wq, bq, wk, bk, wv, bv, gamma)
    out = jax.block_until_ready(out)

    ref = _reference(x, wq, bq, wk, bk, wv, bv, gamma)
    assert out.shape == (B, C, H, W)
    # Tolerance relaxed vs the all-f32 version because the two large matmuls
    # now feed the MXU bf16 operands (f32 accumulation).
    assert jnp.allclose(out, ref, atol=2e-2, rtol=2e-2), "mismatch vs reference"

    print("KERNEL_OK")
</pallas_src>

<mosaic_0001>
module attributes {stable_mosaic.version = 11 : i64} {
  func.func @_nonlocal_kernel(%arg0: i32, %arg1: i32, %arg2: memref<1x16x256xf32, #tpu.memory_space<vmem>>, %arg3: memref<1x16x128xf32, #tpu.memory_space<vmem>>, %arg4: memref<16x16xf32, #tpu.memory_space<vmem>>, %arg5: memref<16x1xf32, #tpu.memory_space<vmem>>, %arg6: memref<16x16xf32, #tpu.memory_space<vmem>>, %arg7: memref<16x1xf32, #tpu.memory_space<vmem>>, %arg8: memref<1x16x128xf32, #tpu.memory_space<vmem>>) attributes {dimension_semantics = [#tpu.dimension_semantics<parallel>, #tpu.dimension_semantics<parallel>], iteration_bounds = array<i64: 2, 2>, scalar_prefetch = 0 : i64, scratch_operands = 0 : i64, tpu.core_type = #tpu.core_type<tc>, window_params = [{transform_indices = @transform_0, window_bounds = array<i64: 1, 16, 256>}, {transform_indices = @transform_1, window_bounds = array<i64: 1, 16, 128>}, {pipeline_mode = #tpu.pipeline_mode<synchronous>, transform_indices = @transform_2, window_bounds = array<i64: 16, 16>}, {pipeline_mode = #tpu.pipeline_mode<synchronous>, transform_indices = @transform_3, window_bounds = array<i64: 16, 1>}, {pipeline_mode = #tpu.pipeline_mode<synchronous>, transform_indices = @transform_4, window_bounds = array<i64: 16, 16>}, {pipeline_mode = #tpu.pipeline_mode<synchronous>, transform_indices = @transform_5, window_bounds = array<i64: 16, 1>}, {transform_indices = @transform_6, window_bounds = array<i64: 1, 16, 128>}]} {
    %c0 = arith.constant 0 : index
    %c0_0 = arith.constant 0 : index
    %c0_1 = arith.constant 0 : index
    %0 = vector.load %arg2[%c0, %c0_0, %c0_1] : memref<1x16x256xf32, #tpu.memory_space<vmem>>, vector<1x16x256xf32>
    %1 = vector.shape_cast %0 : vector<1x16x256xf32> to vector<16x256xf32>
    %c0_2 = arith.constant 0 : index
    %c0_3 = arith.constant 0 : index
    %c0_4 = arith.constant 0 : index
    %2 = vector.load %arg3[%c0_2, %c0_3, %c0_4] : memref<1x16x128xf32, #tpu.memory_space<vmem>>, vector<1x16x128xf32>
    %3 = vector.shape_cast %2 : vector<1x16x128xf32> to vector<16x128xf32>
    %c0_5 = arith.constant 0 : index
    %c0_6 = arith.constant 0 : index
    %4 = vector.load %arg4[%c0_5, %c0_6] : memref<16x16xf32, #tpu.memory_space<vmem>>, vector<16x16xf32>
    %cst = arith.constant dense<0.000000e+00> : vector<16x128xf32>
    %5 = tpu.matmul %4, %3, %cst {dimension_numbers = #tpu.dot_dimension_numbers<[1], [0], [0], [1], [0, 0, 1, 1], [], []>} : vector<16x16xf32>, vector<16x128xf32>, vector<16x128xf32> -> vector<16x128xf32>
    %c0_7 = arith.constant 0 : index
    %c0_8 = arith.constant 0 : index
    %6 = vector.load %arg5[%c0_7, %c0_8] : memref<16x1xf32, #tpu.memory_space<vmem>>, vector<16x1xf32>
    %7 = vector.broadcast %6 : vector<16x1xf32> to vector<16x128xf32>
    %8 = arith.addf %5, %7 : vector<16x128xf32>
    %9 = arith.truncf %1 : vector<16x256xf32> to vector<16x256xbf16>
    %10 = arith.truncf %8 : vector<16x128xf32> to vector<16x128xbf16>
    %cst_9 = arith.constant dense<0.000000e+00> : vector<256x128xf32>
    %11 = tpu.matmul %9, %10, %cst_9 {dimension_numbers = #tpu.dot_dimension_numbers<[0], [0], [1], [1], [0, 1, 1, 1], [], []>} : vector<16x256xbf16>, vector<16x128xbf16>, vector<256x128xf32> -> vector<256x128xf32>
    %cst_10 = arith.constant dense<0xFF800000> : vector<128xf32>
    %12 = vector.multi_reduction <maximumf>, %11, %cst_10 [0] : vector<256x128xf32> to vector<128xf32>
    %13 = vector.shape_cast %12 : vector<128xf32> to vector<1x128xf32>
    %14 = vector.broadcast %13 : vector<1x128xf32> to vector<256x128xf32>
    %15 = arith.subf %11, %14 : vector<256x128xf32>
    %16 = math.exp %15 : vector<256x128xf32>
    %cst_11 = arith.constant dense<0.000000e+00> : vector<128xf32>
    %17 = vector.multi_reduction <add>, %16, %cst_11 [0] : vector<256x128xf32> to vector<128xf32>
    %18 = vector.shape_cast %17 : vector<128xf32> to vector<1x128xf32>
    %19 = arith.truncf %16 : vector<256x128xf32> to vector<256x128xbf16>
    %cst_12 = arith.constant dense<0.000000e+00> : vector<16x128xf32>
    %20 = tpu.matmul %9, %19, %cst_12 {dimension_numbers = #tpu.dot_dimension_numbers<[1], [0], [0], [1], [0, 0, 1, 1], [], []>} : vector<16x256xbf16>, vector<256x128xbf16>, vector<16x128xf32> -> vector<16x128xf32>
    %21 = tpu.reciprocal %18 {approx = true} : vector<1x128xf32> -> vector<1x128xf32>
    %c0_13 = arith.constant 0 : index
    %c0_14 = arith.constant 0 : index
    %22 = vector.load %arg6[%c0_13, %c0_14] : memref<16x16xf32, #tpu.memory_space<vmem>>, vector<16x16xf32>
    %23 = vector.broadcast %21 : vector<1x128xf32> to vector<16x128xf32>
    %24 = arith.mulf %20, %23 : vector<16x128xf32>
    %cst_15 = arith.constant dense<0.000000e+00> : vector<16x128xf32>
    %25 = tpu.matmul %22, %24, %cst_15 {dimension_numbers = #tpu.dot_dimension_numbers<[1], [0], [0], [1], [0, 0, 1, 1], [], []>} : vector<16x16xf32>, vector<16x128xf32>, vector<16x128xf32> -> vector<16x128xf32>
    %c0_16 = arith.constant 0 : index
    %c0_17 = arith.constant 0 : index
    %26 = vector.load %arg7[%c0_16, %c0_17] : memref<16x1xf32, #tpu.memory_space<vmem>>, vector<16x1xf32>
    %27 = vector.broadcast %26 : vector<16x1xf32> to vector<16x128xf32>
    %28 = arith.addf %25, %27 : vector<16x128xf32>
    %29 = arith.addf %28, %3 : vector<16x128xf32>
    %c0_18 = arith.constant 0 : index
    %c0_19 = arith.constant 0 : index
    %c0_20 = arith.constant 0 : index
    %30 = vector.load %arg8[%c0_18, %c0_19, %c0_20] : memref<1x16x128xf32, #tpu.memory_space<vmem>>, vector<1x16x128xf32>
    %31 = vector.shape_cast %30 : vector<1x16x128xf32> to vector<16x128xf32>
    %32 = vector.shape_cast %29 : vector<16x128xf32> to vector<1x16x128xf32>
    tpu.vector_store %arg8[%c0_18, %c0_19, %c0_20], %32 {strides = array<i32>} : memref<1x16x128xf32, #tpu.memory_space<vmem>>, vector<1x16x128xf32>,
    return
  }
  func.func @transform_0(%arg0: i32, %arg1: i32) -> (i32, i32, i32) {
    %c0_i32 = arith.constant 0 : i32
    %c0_i32_0 = arith.constant 0 : i32
    %c0_i32_1 = arith.constant 0 : i32
    return %arg0, %c0_i32, %c0_i32_0 : i32, i32, i32
  }
  func.func @transform_1(%arg0: i32, %arg1: i32) -> (i32, i32, i32) {
    %c0_i32 = arith.constant 0 : i32
    %c0_i32_0 = arith.constant 0 : i32
    return %arg0, %c0_i32, %arg1 : i32, i32, i32
  }
  func.func @transform_2(%arg0: i32, %arg1: i32) -> (i32, i32) {
    %c0_i32 = arith.constant 0 : i32
    %c0_i32_0 = arith.constant 0 : i32
    %c0_i32_1 = arith.constant 0 : i32
    return %c0_i32, %c0_i32_0 : i32, i32
  }
  func.func @transform_3(%arg0: i32, %arg1: i32) -> (i32, i32) {
    %c0_i32 = arith.constant 0 : i32
    %c0_i32_0 = arith.constant 0 : i32
    %c0_i32_1 = arith.constant 0 : i32
    return %c0_i32, %c0_i32_0 : i32, i32
  }
  func.func @transform_4(%arg0: i32, %arg1: i32) -> (i32, i32) {
    %c0_i32 = arith.constant 0 : i32
    %c0_i32_0 = arith.constant 0 : i32
    %c0_i32_1 = arith.constant 0 : i32
    return %c0_i32, %c0_i32_0 : i32, i32
  }
  func.func @transform_5(%arg0: i32, %arg1: i32) -> (i32, i32) {
    %c0_i32 = arith.constant 0 : i32
    %c0_i32_0 = arith.constant 0 : i32
    %c0_i32_1 = arith.constant 0 : i32
    return %c0_i32, %c0_i32_0 : i32, i32
  }
  func.func @transform_6(%arg0: i32, %arg1: i32) -> (i32, i32, i32) {
    %c0_i32 = arith.constant 0 : i32
    %c0_i32_0 = arith.constant 0 : i32
    return %arg0, %c0_i32, %arg1 : i32, i32, i32
  }
}

</mosaic_0001>

<bundles_post_ra>
// kernel: tpu_custom_call.1
= control target key start
LH: loop header
LB: loop body
LE: loop exit
PB: predicated region body
PF: predicated region fallthrough
CT: control target
= control target key end

     0   :  { %s1906_s0 = inlined_call_operand.hbm [shape: f32[2,16,256], index: 0, kind: input, shape index: {}]   ;;  %s1907_s1 = inlined_call_operand.hbm [shape: f32[2,16,256], index: 1, kind: input, shape index: {}]   ;;  %s1908_s2 = inlined_call_operand.vmem [shape: f32[16,16], index: 2, kind: input, shape index: {}]   ;;  %s1909_s3 = inlined_call_operand.vmem [shape: f32[16,1], index: 3, kind: input, shape index: {}]   ;;  %s1910_s4 = inlined_call_operand.vmem [shape: f32[16,16], index: 4, kind: input, shape index: {}]   ;;  %s1911_s5 = inlined_call_operand.vmem [shape: f32[16,1], index: 5, kind: input, shape index: {}]   ;;  %s1912_s6 = inlined_call_operand.hbm [shape: f32[2,16,256], index: 6, kind: output, shape index: {}]  }
   0x1   :  { %1924 = sst [smem:[#allocation18_spill]] %s1906_s0 }
   0x2   :  { %1925 = sst [smem:[#allocation19_spill]] %s1908_s2 }
   0x3   :  { %1926 = sst [smem:[#allocation20_spill]] %s1910_s4 }
   0x4   :  { %1927 = sst [smem:[#allocation21_spill]] %s1911_s5 }
   0x5   :  { %1928 = sst [smem:[#allocation22_spill]] %s1912_s6 }
   0x6   :  { %11 = vsyncpa [#allocation3], 0 }
   0x7   :  { %13 = vsyncpa [#allocation3 + $0x1], 0 }
   0x8   :  { %14 = vsyncpa [#allocation6], 0 }
   0x9   :  { %16 = vsyncpa [#allocation6 + $0x1], 0 }
   0xa   :  { %17 = vsyncpa [#allocation4], 0 }
   0xb   :  { %19 = vsyncpa [#allocation4 + $0x1], 0  ;;  %s1396_s21 = smov 0   ;;  %s1398_s22 = smov 0  }
   0xc   :  { %s1400_s23 = smov 0   ;;  %s1402_s24 = smov 0  }
   0xd   :  { %s1404_s25 = smov 0   ;;  %s1406_s26 = smov 0  }
   0xe   :  { %s1408_s27 = smov 0   ;;  %s1410_s28 = smov 0  }
   0xf   :  { %s1412_s29 = smov 0   ;;  %s1414_s30 = smov 0  }
  0x10   :  { %s1416_s7 = smov 0  }
  0x11 LB: > { %1929 = sst [smem:[#allocation11_spill]] %s1311_s21  ;;  %s938_s8 = sadd.s32 4294967295, %s1351_s7   ;;  %s1351_s7 = sphi %s1416_s7, %s25_s7   ;;  %s1347_s30 = sphi %s1414_s30, %s1967_s30   ;;  %s1343_s29 = sphi %s1412_s29, %s1966_s29   ;;  %s1339_s28 = sphi %s1410_s28, %s1965_s28   ;;  %s1335_s27 = sphi %s1408_s27, %s1964_s27   ;;  %s1331_s26 = sphi %s1406_s26, %s1963_s26   ;;  %s1327_s25 = sphi %s1404_s25, %s1962_s25   ;;  %s1323_s24 = sphi %s1402_s24, %s1961_s24   ;;  %s1319_s23 = sphi %s1400_s23, %s1960_s23   ;;  %s1315_s22 = sphi %s1398_s22, %s1959_s22   ;;  %s1311_s21 = sphi %s1396_s21, %s1958_s21  }
  0x12   : > { %1930 = sst [smem:[#allocation12_spill]] %s1335_s27  ;;  %s37_s9 = sadd.s32 1, %s1347_s30 }
  0x13   : > { %1931 = sst [smem:[#allocation13_spill]] %s1339_s28  ;;  %p51_p0 = scmp.ne.s32.totalorder %s1331_s26, %s1327_s25 }
  0x14   : > { %p52_p1 = scmp.eq.s32.totalorder %s1351_s7, 0  ;;  %p57_p2 = scmp.ne.s32.totalorder %s1327_s25, %s1323_s24 }
  0x15   : > { %p1458_p3 = scmp.eq.s32.totalorder %s938_s8, 0  ;;  %p998_p5 = scmp.lt.s32.totalorder %s1351_s7, 4 }
  0x16   : > { %p53_p4 = por %p52_p1, %p51_p0  ;;  %s233_s13 = sand.u32 1, %s1331_s26  }
  0x17   : > { %p1467_p6 = por %p1458_p3, %p57_p2  ;;  %s942_s14 = sshll.u32 %s233_s13, 5 }
  0x18   : > { %s977_s15 = sshll.u32 %s1347_s30, 5  ;;  %s1934_s0 = sld [smem:[#allocation18_spill]] }
  0x19   : > { %s237_s19 = scalar_lea.vmem [#allocation2], %s942_s14  ;;  %p988_p7 = pnand %p998_p5, %p53_p4 }
  0x1a   : > { %s245_s20 = sshll.u32 %s237_s19, 4  ;;  %p948_p8 = scmp.ge.s32.totalorder %s1351_s7, 1  ;;  %s246_s20 = int_to_ptr.vmem [resolvable:$true] %s245_s20 }
  0x1b   : > { %s234_s16 = scalar_lea.sflag [#allocation3], %s233_s13  ;;  %s1913_s17 = smov 256  }
  0x1c   : > { %s1354_s14 = smov 16   ;;  %p276_p9 = scmp.lt.s32.totalorder %s1351_s7, 5 }
  0x1d   : > { %s34_s19 = sadd.s32 1, %s1343_s29  ;;  %s72_s10 = sadd.s32 1, %s1319_s23 }
  0x1e   : > { %s242_s18 = scalar_lea.hbm %s1934_s0, %s977_s15  ;;  %p1482_p10 = pnand %p948_p8, %p276_p9 }
  0x1f   : > { %s243_s24 = sshll.u32 %s242_s18, 4  ;;  %s939_s18 = sadd.s32 4294967294, %s1351_s7   ;;  %s244_s24 = int_to_ptr.hbm [resolvable:$true] %s243_s24 }
  0x20   : > { %990 = dma.hbm_to_vmem [thread:$0]  (!%p988_p7), %s244_s24, 512, %s246_s20, %s234_s16, %s1913_s17, %s1913_s17, %s1354_s14  }
  0x21   : > { %p35_p11 = scmp.ge.s32.totalorder %s34_s19, 2  ;;  %p79_p12 = scmp.ne.s32.totalorder %s1319_s23, %s1315_s22 }
  0x22   : > { %p85_p13 = scmp.ne.s32.totalorder %s1315_s22, %s1311_s21  ;;  %p195_p7 = scmp.eq.s32.totalorder %s938_s8, 3 }
  0x23   : > { %s1969_s19 = smov (%p35_p11, %s34_s19), 0  ;;  %s1971_s9 = smov (!%p35_p11, %s37_s9), %s1347_s30 }
  0x24   : > { %1936 = sst [smem:[#allocation14_spill]] %s1969_s19  ;;  %s68_s13 = ssub.s32 %s1343_s29, %s1969_s19 }
  0x25   : > { %p1502_p0 = por %p79_p12, %p52_p1  ;;  %p39_p2 = scmp.ge.s32.totalorder %s1971_s9, 2 }
  0x26   : > { %p1508_p4 = por %p85_p13, %p1458_p3  ;;  %p201_p8 = scmp.eq.s32.totalorder %s939_s18, 3 }
  0x27   : > { %s1973_s9 = smov (%p39_p2, %s1971_s9), 0  ;;  %p1516_p9 = por %p195_p7, %p79_p12 }
  0x28   : > { %1939 = sst [smem:[#allocation15_spill]] %s1973_s9  ;;  %p1520_p1 = por %p201_p8, %p85_p13 }
  0x29   : > { %s1940_s16 = scalar_select %p1516_p9, 1, 0 }
  0x2a   : > { %s1942_s14 = scalar_select %p1520_p1, 1, 0 }
  0x2b   : > { %1941 = sst [smem:[#allocation16_spill]] %s1940_s16  ;;  %s41_s11 = ssub.s32 %s1347_s30, %s1973_s9 }
  0x2c   : > { %1943 = sst [smem:[#allocation17_spill]] %s1942_s14  ;;  %s255_s17 = sand.u32 1, %s1319_s23  }
  0x2d   : > { %p42_p3 = scmp.eq.s32.totalorder %s41_s11, 0  ;;  %s69_s0 = sor.u32 %s68_s13, %s41_s11 }
  0x2e   : > { %p70_p11 = scmp.eq.s32.totalorder %s69_s0, 0  ;;  %s1944_s8 = sadd.s32 1, %s1331_s26 }
  0x2f   : > { %s1530_s18 = scalar_select %p42_p3, %s1331_s26, %s1944_s8  }
  0x30   : > { %s1533_s19 = scalar_select %p70_p11, %s1319_s23, %s72_s10  }
  0x31   : > { %s945_s21 = sshll.u32 %s255_s17, 4  ;;  %s946_s6 = sshll.u32 %s1347_s30, 2 }
  0x32   : > { %s263_s4 = sadd.s32 %s1343_s29, %s946_s6  ;;  %s259_s27 = scalar_lea.vmem [#allocation5], %s945_s21 }
  0x33   : > { %s947_s16 = sshll.u32 %s263_s4, 3  ;;  %s268_s28 = sshll.u32 %s259_s27, 4  ;;  %s269_s28 = int_to_ptr.vmem [resolvable:$true] %s268_s28 }
  0x34   : > { %s265_s9 = scalar_lea.hbm %s1907_s1, %s947_s16  ;;  %p991_p12 = pnand %p998_p5, %p1502_p0 }
  0x35   : > { %s266_s2 = sshll.u32 %s265_s9, 4  ;;  %s256_s0 = scalar_lea.sflag [#allocation6], %s255_s17  ;;  %s267_s2 = int_to_ptr.hbm [resolvable:$true] %s266_s2 }
  0x36   : > { %s1355_s13 = smov 128   ;;  %s1356_s10 = smov 8  }
  0x37   : > { %s1945_s11 = smov 256   ;;  %280 = sbr.rel (%p1482_p10) target bundleno = 902 (0x386), region = 44 }
  0x38   : > { %993 = dma.hbm_to_vmem [thread:$0]  (!%p991_p12), %s267_s2, 256, %s269_s28, %s256_s0, %s1945_s11, %s1355_s13, %s1356_s10  }
  0x39   : > { %s282_s4 = sand.u32 (!%p1482_p10), 1, %s1327_s25  }
  0x3a   : > { %s949_s6 = sshll.u32 (!%p1482_p10), %s282_s4, 5  ;;  %s283_s5 = scalar_lea.sflag (!%p1482_p10), [#allocation3], %s282_s4 }
  0x3b   : > { %s286_s21 = scalar_lea.vmem (!%p1482_p10), [#allocation2], %s949_s6 }
  0x3c   : > { %1298 = dma.done.wait (%p1467_p6), %s283_s5, 512  }
  0x3d   : > { %1300 = vsyncadd (%p1467_p6), %s283_s5, 4294966784  ;;  %s1553_s27 = sand.u32 1, %s1315_s22  }
  0x3e   : > { %s950_s2 = sshll.u32 %s1553_s27, 4  ;;  %s293_s28 = scalar_lea.sflag [#allocation6], %s1553_s27 }
  0x3f   : > { %s296_s9 = scalar_lea.vmem [#allocation5], %s950_s2 }
  0x40   : > { %1302 = dma.done.wait (%p1508_p4), %s293_s28, 256  }
  0x41   : > { %1304 = vsyncadd (%p1508_p4), %s293_s28, 4294967040  ;;  %v1357_v0 = vmov 0   ;;  %v332_v1 = vld [vmem:[%s286_s21] sm:$0xff]  ;;  %v333_v2 = vld [vmem:[%s286_s21 + $0x8] sm:$0xff]  ;;  %s1946_s24 = sld [smem:[#allocation19_spill]]  ;;  %vm352_vm0 = vcmask 130048  }
  0x42   : > { %1096 = vset.pattern.permute.xlu0 %v1357_v0  ;;  %1098 = vset.pattern.permute.xlu2 %v1357_v0  ;;  %v334_v3 = vld [vmem:[%s286_s21 + $0x10] sm:$0xff]  ;;  %v335_v4 = vld [vmem:[%s286_s21 + $0x18] sm:$0xff]  ;;  %v340_v9 = vld [vmem:[%s1909_s3] sm:$0xff]  ;;  %s1948_s4 = sld [smem:[#allocation21_spill]]  ;;  %s330_s6 = scalar_lea.vmem [#allocation7], %s950_s2 }
  0x43   : > { %v1563_v5 = vpack.c.bf16 %v334_v3, %v332_v1  ;;  %v1565_v6 = vld [vmem:[%s296_s9 + $0x8] sm:$0xff]  ;;  %v1567_v7 = vpack.c.bf16 %v335_v4, %v333_v2  ;;  %v1570_v8 = vld [vmem:[%s296_s9] sm:$0xff]  ;;  %344 = vperm.xlu0 %1096, %v340_v9   ;;  %s1949_s21 = sld [smem:[#allocation13_spill]]  ;;  %s824_s9 = sshll.u32 %s330_s6, 4  ;;  %s825_s9 = int_to_ptr.vmem [resolvable:$true] %s824_s9 }
  0x44   : > { %373 = vmatpush.msra.mxu2 %v1565_v6  ;;  %v341_v11 = vld [vmem:[%s1909_s3 + $0x8] sm:$0xff]  ;;  %s1950_s28 = sld [smem:[#allocation12_spill]] }
  0x45   : > { %385 = vxpose.binary.xlu1.c.b16.start.end [1/2] (short) %v1567_v7, %v1563_v5, 128  ;;  %s1951_s17 = sld [smem:[#allocation20_spill]] }
  0x46   : > { %374 = vmatpush.msra.mxu2 %v1570_v8  ;;  %s1952_s10 = sld [smem:[#allocation22_spill]] }
  0x47   : > { %s1947_s16 = smov %s1946_s24  ;;  %v338_v10 = vld [vmem:[%s1946_s24] sm:$0xff] }
  0x48   : > { %952 = vmatmul.msk.f32.vlgmr.msra.gmra.mxu2 %vm352_vm0, %v338_v10  ;;  %v339_v12 = vld [vmem:[%s1947_s16 + $0x8] sm:$0xff] }
  0x49   : > { %s973_s24 = sshll.u32 %s1949_s21, 2  ;;  %s811_s21 = scalar_lea.sflag [#allocation4], %s1553_s27 }
  0x4a   : > { %s821_s14 = sadd.s32 %s1950_s28, %s973_s24 }
  0x4b   : > { %349 = vperm.xlu0 %1096, %v341_v11   ;;  %s974_s8 = sshll.u32 %s821_s14, 3 }
  0x4c   : > { %s823_s11 = scalar_lea.hbm %s1952_s10, %s974_s8  ;;  %s1245_s24 = scalar_lea.hbm %s1952_s10, 64 }
  0x4d   : > { %s826_s12 = sshll.u32 %s823_s11, 4  ;;  %s827_s12 = int_to_ptr.hbm [resolvable:$true] %s826_s12 }
  0x4e   : > { %s1239_s28 = sshra.s32 %s827_s12, 4  ;;  %s1240_s28 = int_to_ptr.hbm [resolvable:$true] %s1239_s28 }
  0x4f   : > { %s1241_s15 = scalar_lea.hbm %s1240_s28, 16  ;;  %p1246_p13 = scmp.lt.s32.totalorder %s1240_s28, %s1952_s10 }
  0x50   : > { %953 = vmatmul.msk.f32.gmra.mxu2 %vm352_vm0, %v339_v12  ;;  %p1242_p5 = scmp.ne.s32.totalorder %s1240_s28, %s1241_s15  ;;  %p1247_p0 = scmp.lt.s32.totalorder %s1245_s24, %s1241_s15 }
  0x52   : > { %p1243_p6 = pnand %p1242_p5, %p1516_p9  ;;  %p1248_p2 = por %p1247_p0, %p1246_p13 }
  0x54   : > { %p1244_p10 = pneg %p1243_p6 }
  0x56   : > { %p1249_p4 = pnand %p1248_p2, %p1244_p10 }
  0x98   : > { %1097 = vset.pattern.permute.xlu1 %v1357_v0 }
  0xb5   : > { %v345_v13 = vpop.permute.xlu0 %344 }
  0xbd   : > { %v350_v15 = vpop.permute.xlu0 %349 }
  0xcb   : > { %v376_v14 = vpop.f32.mrf.mxu2 }
  0xcc   : > { %v377_v16 = vadd.f32 %v376_v14, %v345_v13 }
  0xd3   : > { %v379_v17 = vpop.f32.mrf.mxu2 }
  0xd4   : > { %v380_v18 = vadd.f32 %v379_v17, %v350_v15 }
  0xd6   : > { %v384_v19 = vpack.c.bf16 %v380_v18, %v377_v16 }
  0xd8   : > { %464 = vmatpush.bf16.msra.mxu0 %v384_v19  ;;  %979 = vmatpush.bf16.msrb.mxu2 %v384_v19 }
  0xd9   : > { %978 = vmatpush.bf16.msra.mxu1 %v384_v19  ;;  %980 = vmatpush.bf16.msra.mxu3 %v384_v19 }
  0xf1   : > { %v393_v20 = vpop.trf.xlu1 }
  0xf2   : > { %954 = vmatmul.msk.bf16.vlgmr.msra.gmra.mxu0 %vm352_vm0, %v393_v20 }
  0xf9   : > { %v394_v21 = vpop.trf.xlu1 }
 0x101   : > { %v395_v22 = vpop.trf.xlu1 }
 0x102   : > { %955 = vmatmul.msk.bf16.gmra.mxu0 %vm352_vm0, %v395_v22 }
 0x109   : > { %v396_v23 = vpop.trf.xlu1 }
 0x111   : > { %v397_v24 = vpop.trf.xlu1 }
 0x112   : > { %956 = vmatmul.msk.bf16.gmra.mxu0 %vm352_vm0, %v397_v24 }
 0x119   : > { %v398_v25 = vpop.trf.xlu1 }
 0x11a   : > { %964 = vmatmul.msk.bf16.vlgmr.msrb.gmra.mxu2 %vm352_vm0, %v398_v25 }
 0x121   : > { %v399_v26 = vpop.trf.xlu1 }
 0x122   : > { %957 = vmatmul.msk.bf16.gmra.mxu0 %vm352_vm0, %v399_v26 }
 0x129   : > { %v400_v27 = vpop.trf.xlu1 }
 0x12a   : > { %965 = vmatmul.msk.bf16.gmra.mxu2 %vm352_vm0, %v400_v27 }
 0x131   : > { %v401_v28 = vpop.trf.xlu1 }
 0x132   : > { %958 = vmatmul.msk.bf16.vlgmr.msra.gmra.mxu1 %vm352_vm0, %v401_v28 }
 0x139   : > { %v402_v29 = vpop.trf.xlu1 }
 0x13a   : > { %966 = vmatmul.msk.bf16.vlgmr.msra.gmra.mxu3 %vm352_vm0, %v402_v29 }
 0x141   : > { %v403_v30 = vpop.trf.xlu1 }
 0x142   : > { %959 = vmatmul.msk.bf16.gmra.mxu1 %vm352_vm0, %v403_v30 }
 0x149   : > { %v404_v31 = vpop.trf.xlu1 }
 0x14a   : > { %967 = vmatmul.msk.bf16.gmra.mxu3 %vm352_vm0, %v404_v31 }
 0x151   : > { %v405_v32 = vpop.trf.xlu1 }
 0x152   : > { %960 = vmatmul.msk.bf16.gmra.mxu1 %vm352_vm0, %v405_v32 }
 0x159   : > { %v406_v33 = vpop.trf.xlu1 }
 0x15a   : > { %968 = vmatmul.msk.bf16.gmra.mxu3 %vm352_vm0, %v406_v33 }
 0x161   : > { %v407_v34 = vpop.trf.xlu1 }
 0x162   : > { %961 = vmatmul.msk.bf16.gmra.mxu1 %vm352_vm0, %v407_v34 }
 0x169   : > { %v408_v35 = vpop.trf.xlu1 }
 0x16a   : > { %969 = vmatmul.msk.bf16.gmra.mxu3 %vm352_vm0, %v408_v35 }
 0x16f   : > { %v1609_v38 = vpop.f32.mrf.mxu0 }
 0x172   : > { %962 = vmatmul.msk.bf16.gmra.mxu1 %vm352_vm0, %v394_v21 }
 0x177   : > { %v1613_v40 = vpop.f32.mrf.mxu0 }
 0x17f   : > { %v1619_v43 = vpop.f32.mrf.mxu0 }
 0x182   : > { %963 = vmatmul.msk.bf16.gmra.mxu1 %vm352_vm0, %v396_v23 }
 0x187   : > { %v1625_v46 = vpop.f32.mrf.mxu0 }
 0x18f   : > { %v1633_v50 = vpop.f32.mrf.mxu0 }
 0x190   : > { %v546_v62 = vmax.f32 %v1609_v38, %v1633_v50 }
 0x197   : > { %v1639_v53 = vpop.f32.mrf.mxu0 }
 0x198   : > { %v547_v60 = vmax.f32 %v1613_v40, %v1639_v53 }
 0x19d   : > { %v1641_v54 = vpop.f32.mrf.mxu2 }
 0x19f   : > { %v1647_v57 = vpop.f32.mrf.mxu0 }
 0x1a0   : > { %v548_v63 = vmax.f32 %v1619_v43, %v1647_v57 }
 0x1a5   : > { %v1649_v58 = vpop.f32.mrf.mxu2 }
 0x1a7   : > { %v1662_v1 = vpop.f32.mrf.mxu0 }
 0x1a8   : > { %v549_v14 = vmax.f32 %v1625_v46, %v1662_v1 }
 0x1ad   : > { %v1667_v9 = vpop.f32.mrf.mxu2 }
 0x1af   : > { %v1605_v36 = vpop.f32.mrf.mxu1 }
 0x1b0   : > { %v550_v2 = vmax.f32 %v546_v62, %v1605_v36 }
 0x1b5   : > { %v1689_v26 = vpop.f32.mrf.mxu2 }
 0x1b7   : > { %v1607_v37 = vpop.f32.mrf.mxu1 }
 0x1b8   : > { %v551_v0 = vmax.f32 %v547_v60, %v1607_v37 }
 0x1bd   : > { %v1617_v42 = vpop.f32.mrf.mxu3 }
 0x1bf   : > { %v1611_v39 = vpop.f32.mrf.mxu1 }
 0x1c0   : > { %v552_v3 = vmax.f32 %v548_v63, %v1611_v39 }
 0x1c5   : > { %v1623_v45 = vpop.f32.mrf.mxu3 }
 0x1c7   : > { %v1615_v41 = vpop.f32.mrf.mxu1 }
 0x1c8   : > { %v553_v18 = vmax.f32 %v549_v14, %v1615_v41 }
 0x1cd   : > { %v1629_v48 = vpop.f32.mrf.mxu3 }
 0x1cf   : > { %v1621_v44 = vpop.f32.mrf.mxu1 }
 0x1d0   : > { %v554_v11 = vmax.f32 %v550_v2, %v1621_v44 }
 0x1d5   : > { %v1635_v51 = vpop.f32.mrf.mxu3 }
 0x1d7   : > { %v1627_v47 = vpop.f32.mrf.mxu1 }
 0x1d8   : > { %v555_v4 = vmax.f32 %v551_v0, %v1627_v47 }
 0x1dd   : > { %v1645_v56 = vpop.f32.mrf.mxu3 }
 0x1df   : > { %v1631_v49 = vpop.f32.mrf.mxu1 }
 0x1e0   : > { %v556_v12 = vmax.f32 %v552_v3, %v1631_v49 }
 0x1e5   : > { %v1655_v61 = vpop.f32.mrf.mxu3 }
 0x1e7   : > { %v1637_v52 = vpop.f32.mrf.mxu1 }
 0x1e8   : > { %v557_v20 = vmax.f32 %v553_v18, %v1637_v52 }
 0x1ed   : > { %v1678_v17 = vpop.f32.mrf.mxu3 }
 0x1ef   : > { %v1643_v55 = vpop.f32.mrf.mxu1 }
 0x1f0   : > { %v558_v15 = vmax.f32 %v554_v11, %v1643_v55 }
 0x1f2   : > { %v562_v21 = vmax.f32 %v558_v15, %v1641_v54 }
 0x1f4   : > { %v566_v27 = vmax.f32 %v562_v21, %v1617_v42 }
 0x1f5   : > { %v1696_v32 = vpop.f32.mrf.mxu3 }
 0x1f6   : > { %v570_v33 = vmax.f32 %v566_v27, %v1645_v56 }
 0x1f7   : > { %v1651_v59 = vpop.f32.mrf.mxu1 }
 0x1f8   : > { %v559_v13 = vmax.f32 %v555_v4, %v1651_v59 }
 0x1fa   : > { %v563_v19 = vmax.f32 %v559_v13, %v1649_v58 }
 0x1fc   : > { %v567_v24 = vmax.f32 %v563_v19, %v1623_v45 }
 0x1fe   : > { %v571_v30 = vmax.f32 %v567_v24, %v1655_v61 }
 0x1ff   : > { %v1669_v10 = vpop.f32.mrf.mxu1 }
 0x200   : > { %v560_v16 = vmax.f32 %v556_v12, %v1669_v10  ;;  %v574_v60 = vmax.f32 %v570_v33, %v571_v30 }
 0x202   : > { %v564_v22 = vmax.f32 %v560_v16, %v1667_v9 }
 0x204   : > { %v568_v28 = vmax.f32 %v564_v22, %v1629_v48 }
 0x206   : > { %v572_v34 = vmax.f32 %v568_v28, %v1678_v17 }
 0x207   : > { %v1685_v23 = vpop.f32.mrf.mxu1 }
 0x208   : > { %v561_v25 = vmax.f32 %v557_v20, %v1685_v23 }
 0x20a   : > { %v565_v29 = vmax.f32 %v561_v25, %v1689_v26 }
 0x20c   : > { %v569_v31 = vmax.f32 %v565_v29, %v1635_v51 }
 0x20e   : > { %v573_v35 = vmax.f32 %v569_v31, %v1696_v32 }
 0x210   : > { %v575_v62 = vmax.f32 %v572_v34, %v573_v35 }
 0x212   : > { %v576_v63 = vmax.f32 %v574_v60, %v575_v62 }
 0x214   : > { %v577_v0 = vrot.slane %v576_v63, 4 }
 0x216   : > { %v578_v2 = vmax.f32 %v576_v63, %v577_v0 }
 0x218   : > { %v579_v3 = vrot.slane %v578_v2, 2 }
 0x21a   : > { %v580_v4 = vmax.f32 %v578_v2, %v579_v3 }
 0x21c   : > { %v581_v11 = vrot.slane %v580_v4, 1 }
 0x21e   : > { %v1701_v12 = vmax.f32 %v580_v4, %v581_v11 }
 0x220   : > { %v583_v13 = vsub.f32 %v1609_v38, %v1701_v12  ;;  %v584_v14 = vsub.f32 %v1613_v40, %v1701_v12  ;;  %v585_v15 = vsub.f32 %v1619_v43, %v1701_v12  ;;  %v586_v16 = vsub.f32 %v1625_v46, %v1701_v12 }
 0x221   : > { %v587_v18 = vsub.f32 %v1633_v50, %v1701_v12  ;;  %v588_v19 = vsub.f32 %v1639_v53, %v1701_v12  ;;  %v589_v21 = vsub.f32 %v1647_v57, %v1701_v12  ;;  %v590_v40 = vsub.f32 %v1662_v1, %v1701_v12 }
 0x222   : > { %v615_v20 = vmul.f32 1.442695, %v583_v13  ;;  %v617_v38 = vmul.f32 1.442695, %v584_v14  ;;  %v619_v22 = vmul.f32 1.442695, %v585_v15  ;;  %v591_v46 = vsub.f32 %v1605_v36, %v1701_v12 }
 0x223   : > { %v621_v43 = vmul.f32 1.442695, %v586_v16  ;;  %v623_v24 = vmul.f32 1.442695, %v587_v18  ;;  %v592_v50 = vsub.f32 %v1607_v37, %v1701_v12  ;;  %v625_v53 = vmul.f32 1.442695, %v588_v19 }
 0x224   : > { %1099 = vpow2.f32 %v615_v20  ;;  %v593_v25 = vsub.f32 %v1611_v39, %v1701_v12  ;;  %v627_v57 = vmul.f32 1.442695, %v589_v21  ;;  %v595_v27 = vsub.f32 %v1621_v44, %v1701_v12 }
 0x225   : > { %1101 = vpow2.f32 %v617_v38  ;;  %v629_v1 = vmul.f32 1.442695, %v590_v40  ;;  %v596_v28 = vsub.f32 %v1627_v47, %v1701_v12  ;;  %v631_v36 = vmul.f32 1.442695, %v591_v46 }
 0x226   : > { %1103 = vpow2.f32 %v619_v22  ;;  %v597_v37 = vsub.f32 %v1631_v49, %v1701_v12  ;;  %v633_v30 = vmul.f32 1.442695, %v592_v50  ;;  %v598_v31 = vsub.f32 %v1637_v52, %v1701_v12 }
 0x227   : > { %1105 = vpow2.f32 %v621_v43  ;;  %v635_v44 = vmul.f32 1.442695, %v593_v25  ;;  %v599_v33 = vsub.f32 %v1643_v55, %v1701_v12  ;;  %v639_v47 = vmul.f32 1.442695, %v595_v27 }
 0x228   : > { %1107 = vpow2.f32 %v623_v24  ;;  %v600_v49 = vsub.f32 %v1651_v59, %v1701_v12  ;;  %v641_v60 = vmul.f32 1.442695, %v596_v28  ;;  %v601_v52 = vsub.f32 %v1669_v10, %v1701_v12 }
 0x229   : > { %1109 = vpow2.f32 %v625_v53  ;;  %v643_v63 = vmul.f32 1.442695, %v597_v37  ;;  %v602_v2 = vsub.f32 %v1685_v23, %v1701_v12  ;;  %v645_v3 = vmul.f32 1.442695, %v598_v31 }
 0x22a   : > { %v1729_v29 = vpop.eup %1099  ;;  %1111 = vpow2.f32 %v627_v57  ;;  %v647_v59 = vmul.f32 1.442695, %v599_v33  ;;  %v594_v10 = vsub.f32 %v1615_v41, %v1701_v12  ;;  %v649_v14 = vmul.f32 1.442695, %v600_v49 }
 0x22b   : > { %v1733_v39 = vpop.eup %1101  ;;  %1113 = vpow2.f32 %v629_v1  ;;  %v651_v16 = vmul.f32 1.442695, %v601_v52  ;;  %v653_v19 = vmul.f32 1.442695, %v602_v2  ;;  %v613_v57 = vsub.f32 %v1678_v17, %v1701_v12 }
 0x22c   : > { %v679_v34 = vadd.f32 %v1733_v39, %v1729_v29  ;;  %v1741_v35 = vpop.eup %1103  ;;  %1115 = vpow2.f32 %v631_v36  ;;  %v637_v22 = vmul.f32 1.442695, %v594_v10  ;;  %v614_v28 = vsub.f32 %v1696_v32, %v1701_v12 }
 0x22d   : > { %v1745_v62 = vpop.eup %1105  ;;  %1117 = vpow2.f32 %v633_v30  ;;  %v611_v30 = vsub.f32 %v1645_v56, %v1701_v12  ;;  %v612_v17 = vsub.f32 %v1655_v61, %v1701_v12  ;;  %v609_v56 = vsub.f32 %v1629_v48, %v1701_v12 }
 0x22e   : > { %v680_v55 = vadd.f32 %v1741_v35, %v679_v34  ;;  %v1750_v0 = vpop.eup %1107  ;;  %1119 = vpow2.f32 %v635_v44  ;;  %v603_v61 = vsub.f32 %v1641_v54, %v1701_v12  ;;  %v607_v48 = vsub.f32 %v1617_v42, %v1701_v12 }
 0x22f   : > { %v1754_v4 = vpop.eup %1109  ;;  %1121 = vpow2.f32 %v639_v47  ;;  %v675_v47 = vmul.f32 1.442695, %v613_v57  ;;  %v673_v2 = vmul.f32 1.442695, %v612_v17  ;;  %v667_v10 = vmul.f32 1.442695, %v609_v56 }
 0x230   : > { %v681_v11 = vadd.f32 %v1745_v62, %v680_v55  ;;  %v1757_v13 = vpop.eup %1111  ;;  %1123 = vpow2.f32 %v641_v60  ;;  %v677_v60 = vmul.f32 1.442695, %v614_v28  ;;  %v610_v55 = vsub.f32 %v1635_v51, %v1701_v12 }
 0x231   : > { %v1761_v15 = vpop.eup %1113  ;;  %1125 = vpow2.f32 %v643_v63  ;;  %v671_v63 = vmul.f32 1.442695, %v611_v30  ;;  %v608_v51 = vsub.f32 %v1623_v45, %v1701_v12  ;;  %v655_v54 = vmul.f32 1.442695, %v603_v61 }
 0x232   : > { %v682_v23 = vadd.f32 %v1750_v0, %v681_v11  ;;  %v1764_v18 = vpop.eup %1115  ;;  %1127 = vpow2.f32 %v645_v3  ;;  %v604_v11 = vsub.f32 %v1649_v58, %v1701_v12  ;;  %v605_v58 = vsub.f32 %v1667_v9, %v1701_v12 }
 0x233   : > { %v1766_v20 = vpop.eup %1117  ;;  %1129 = vpow2.f32 %v647_v59  ;;  %v663_v42 = vmul.f32 1.442695, %v607_v48  ;;  %v606_v45 = vsub.f32 %v1689_v26, %v1701_v12  ;;  %v719_v9 = vpack.c.bf16 %v1761_v15, %v1757_v13 }
 0x234   : > { %v683_v21 = vadd.f32 %v1754_v4, %v682_v23  ;;  %v1120_v38 = vpop.eup %1119  ;;  %1131 = vpow2.f32 %v649_v14  ;;  %v716_v56 = vpack.c.bf16 %v1733_v39, %v1729_v29 }
 0x235   : > { %v1122_v41 = vpop.eup %1121  ;;  %1133 = vpow2.f32 %v651_v16  ;;  %v669_v16 = vmul.f32 1.442695, %v610_v55  ;;  %v661_v26 = vmul.f32 1.442695, %v606_v45 }
 0x236   : > { %v684_v40 = vadd.f32 %v1757_v13, %v683_v21  ;;  %v1124_v43 = vpop.eup %1123  ;;  %1135 = vpow2.f32 %v653_v19  ;;  %v720_v19 = vpack.c.bf16 %v1766_v20, %v1764_v18  ;;  %v657_v21 = vmul.f32 1.442695, %v604_v11 }
 0x237   : > { %v1126_v46 = vpop.eup %1125  ;;  %1137 = vpow2.f32 %v637_v22  ;;  %v722_v34 = vpack.c.bf16 %v1124_v43, %v1122_v41 }
 0x238   : > { %v685_v24 = vadd.f32 %v1761_v15, %v684_v40  ;;  %v1128_v50 = vpop.eup %1127  ;;  %1139 = vpow2.f32 %v675_v47  ;;  %v665_v40 = vmul.f32 1.442695, %v608_v51  ;;  %v717_v47 = vpack.c.bf16 %v1745_v62, %v1741_v35  ;;  %v765_v51 = vld [vmem:[%s1948_s4] sm:$0xff] }
 0x239   : > { %v1771_v53 = vpop.eup %1129  ;;  %v723_v27 = vpack.c.bf16 %v1128_v50, %v1126_v46  ;;  %1141 = vpow2.f32 %v677_v60  ;;  %769 = vperm.xlu1 %1097, %v765_v51  }
 0x23a   : > { %v686_v25 = vadd.f32 %v1764_v18, %v685_v24  ;;  %v1776_v1 = vpop.eup %1131  ;;  %1143 = vpow2.f32 %v671_v63  ;;  %v659_v24 = vmul.f32 1.442695, %v605_v58 }
 0x23b   : > { %v1780_v36 = vpop.eup %1133  ;;  %732 = vmatpush.bf16.msra.mxu2 %v723_v27  ;;  %v724_v31 = vpack.c.bf16 %v1776_v1, %v1771_v53  ;;  %1145 = vpow2.f32 %v673_v2  ;;  %v718_v27 = vpack.c.bf16 %v1754_v4, %v1750_v0 }
 0x23c   : > { %v687_v37 = vadd.f32 %v1766_v20, %v686_v25  ;;  %v1787_v44 = vpop.eup %1135  ;;  %1147 = vpow2.f32 %v667_v10 }
 0x23d   : > { %v725_v32 = vpack.c.bf16 %v1787_v44, %v1780_v36  ;;  %v1138_v49 = vpop.eup %1137  ;;  %1149 = vpow2.f32 %v669_v16 }
 0x23e   : > { %v688_v33 = vadd.f32 %v1120_v38, %v687_v37  ;;  %v721_v59 = vpack.c.bf16 %v1138_v49, %v1120_v38  ;;  %v1809_v38 = vpop.eup %1139  ;;  %1151 = vpow2.f32 %v655_v54 }
 0x23f   : > { %733 = vmatpush.bf16.msra.mxu2 %v722_v34  ;;  %1153 = vpow2.f32 %v657_v21  ;;  %v761_v21 = vld [vmem:[%s1951_s17] sm:$0xff] }
 0x240   : > { %v689_v52 = vadd.f32 %v1138_v49, %v688_v33  ;;  %1155 = vpow2.f32 %v663_v42 }
 0x241   : > { %1157 = vpow2.f32 %v665_v40 }
 0x242   : > { %v690_v3 = vadd.f32 %v1122_v41, %v689_v52  ;;  %v1142_v41 = vpop.eup %1141  ;;  %1159 = vpow2.f32 %v659_v24 }
 0x243   : > { %734 = vmatpush.bf16.msra.mxu2 %v721_v59  ;;  %v731_v20 = vpack.c.bf16 %v1142_v41, %v1809_v38  ;;  %1161 = vpow2.f32 %v661_v26 }
 0x244   : > { %v691_v14 = vadd.f32 %v1124_v43, %v690_v3  ;;  %v1144_v43 = vpop.eup %1143 }
 0x245   : > { %746 = vmatpush.bf16.msrb.mxu3 %v731_v20 }
 0x246   : > { %v692_v23 = vadd.f32 %v1126_v46, %v691_v14  ;;  %v1146_v46 = vpop.eup %1145 }
 0x247   : > { %735 = vmatpush.bf16.msra.mxu2 %v720_v19  ;;  %v1148_v12 = vpop.eup %1147  ;;  %v730_v57 = vpack.c.bf16 %v1146_v46, %v1144_v43 }
 0x248   : > { %v693_v22 = vadd.f32 %v1128_v50, %v692_v23  ;;  %v1150_v28 = vpop.eup %1149 }
 0x249   : > { %v1152_v13 = vpop.eup %1151  ;;  %747 = vmatpush.bf16.msrb.mxu3 %v730_v57  ;;  %v729_v33 = vpack.c.bf16 %v1150_v28, %v1148_v12 }
 0x24a   : > { %v694_v18 = vadd.f32 %v1771_v53, %v693_v22  ;;  %v1154_v37 = vpop.eup %1153 }
 0x24b   : > { %736 = vmatpush.bf16.msra.mxu2 %v719_v9  ;;  %v1156_v30 = vpop.eup %1155  ;;  %v726_v62 = vpack.c.bf16 %v1154_v37, %v1152_v13 }
 0x24c   : > { %v695_v50 = vadd.f32 %v1776_v1, %v694_v18  ;;  %v1158_v34 = vpop.eup %1157 }
 0x24d   : > { %748 = vmatpush.bf16.msrb.mxu3 %v729_v33  ;;  %v1160_v0 = vpop.eup %1159  ;;  %v728_v60 = vpack.c.bf16 %v1158_v34, %v1156_v30 }
 0x24e   : > { %v696_v25 = vadd.f32 %v1780_v36, %v695_v50  ;;  %v1162_v52 = vpop.eup %1161  ;;  %v766_v36 = vld [vmem:[%s1948_s4 + $0x8] sm:$0xff] }
 0x24f   : > { %737 = vmatpush.bf16.msra.mxu2 %v718_v27  ;;  %v727_v2 = vpack.c.bf16 %v1162_v52, %v1160_v0  ;;  %774 = vperm.xlu2 %1098, %v766_v36  }
 0x250   : > { %v697_v15 = vadd.f32 %v1787_v44, %v696_v25 }
 0x251   : > { %749 = vmatpush.bf16.msrb.mxu3 %v728_v60 }
 0x252   : > { %v698_v17 = vadd.f32 %v1152_v13, %v697_v15 }
 0x253   : > { %738 = vmatpush.bf16.msra.mxu2 %v717_v47 }
 0x254   : > { %v699_v49 = vadd.f32 %v1154_v37, %v698_v17 }
 0x255   : > { %750 = vmatpush.bf16.msrb.mxu3 %v727_v2 }
 0x256   : > { %v700_v4 = vadd.f32 %v1160_v0, %v699_v49 }
 0x257   : > { %739 = vmatpush.bf16.msra.mxu2 %v716_v56 }
 0x258   : > { %v701_v63 = vadd.f32 %v1162_v52, %v700_v4 }
 0x259   : > { %751 = vmatpush.bf16.msrb.mxu3 %v726_v62 }
 0x25a   : > { %v702_v55 = vadd.f32 %v1156_v30, %v701_v63  ;;  %740 = vmatmul.bf16.vlgmr.msra.gmra.mxu2 %v1563_v5 }
 0x25c   : > { %v703_v61 = vadd.f32 %v1158_v34, %v702_v55 }
 0x25d   : > { %752 = vmatpush.bf16.msrb.mxu3 %v725_v32 }
 0x25e   : > { %v704_v35 = vadd.f32 %v1148_v12, %v703_v61 }
 0x260   : > { %v705_v3 = vadd.f32 %v1150_v28, %v704_v35 }
 0x261   : > { %753 = vmatpush.bf16.msrb.mxu3 %v724_v31 }
 0x262   : > { %v706_v59 = vadd.f32 %v1144_v43, %v705_v3 }
 0x264   : > { %v707_v29 = vadd.f32 %v1146_v46, %v706_v59  ;;  %754 = vmatmul.bf16.vlgmr.msrb.gmra.mxu3 %v1567_v7 }
 0x266   : > { %v708_v39 = vadd.f32 %v1809_v38, %v707_v29  ;;  %v762_v38 = vld [vmem:[%s1951_s17 + $0x8] sm:$0xff] }
 0x268   : > { %v709_v11 = vadd.f32 %v1142_v41, %v708_v39 }
 0x26a   : > { %v710_v5 = vrot.slane %v709_v11, 4 }
 0x26c   : > { %v711_v48 = vadd.f32 %v710_v5, %v709_v11 }
 0x26e   : > { %v712_v10 = vrot.slane %v711_v48, 2 }
 0x270   : > { %v713_v14 = vadd.f32 %v712_v10, %v711_v48 }
 0x272   : > { %v714_v53 = vrot.slane %v713_v14, 1 }
 0x274   : > { %v715_v31 = vadd.f32 %v714_v53, %v713_v14 }
 0x276   : > { %1163 = vrcp.f32 %v715_v31 }
 0x27c   : > { %v1164_v23 = vpop.eup %1163 }
 0x2a9   : > { %v775_v40 = vpop.permute.xlu2 %774 }
 0x2ab   : > { %v770_v42 = vpop.permute.xlu1 %769 }
 0x2dd   : > { %v741_v44 = vpop.f32.mrf.mxu2 }
 0x2e5   : > { %v743_v7 = vpop.f32.mrf.mxu2 }
 0x2e7   : > { %v755_v1 = vpop.f32.mrf.mxu3 }
 0x2e8   : > { %v756_v16 = vadd.f32 %v755_v1, %v741_v44 }
 0x2ea   : > { %v763_v58 = vmul.f32 %v1164_v23, %v756_v16 }
 0x2ef   : > { %v757_v32 = vpop.f32.mrf.mxu3 }
 0x2f0   : > { %v758_v54 = vadd.f32 %v757_v32, %v743_v7 }
 0x2f2   : > { %v764_v19 = vmul.f32 %v1164_v23, %v758_v54 }
 0x2f4   : > { %797 = vmatpush.msrb.mxu0 %v764_v19 }
 0x2f6   : > { %798 = vmatpush.msrb.mxu0 %v763_v58 }
 0x2f7   : > { %970 = vmatmul.msk.f32.vlgmr.msrb.gmra.mxu0 %vm352_vm0, %v761_v21 }
 0x2ff   : > { %971 = vmatmul.msk.f32.gmra.mxu0 %vm352_vm0, %v762_v38 }
 0x374   : > { %v800_v22 = vpop.f32.mrf.mxu0 }
 0x375   : > { %v801_v41 = vadd.f32 %v800_v22, %v770_v42 }
 0x377   : > { %v806_v45 = vadd.f32 %v801_v41, %v1570_v8 }
 0x379   : > { %808 = vst [vmem:[%s330_s6] sm:$0xff] %v806_v45 }
 0x37c   : > { %v803_v43 = vpop.f32.mrf.mxu0 }
 0x37d   : > { %v804_v18 = vadd.f32 %v803_v43, %v775_v40 }
 0x37f   : > { %v807_v20 = vadd.f32 %v804_v18, %v1565_v6 }
 0x381   : > { %809 = vst [vmem:[%s330_s6 + $0x8] sm:$0xff] %v807_v20 }
 0x382   : > { %1252 = shalt.err (!%p1249_p4)
}
 0x383   : > { %s1358_s27 = smov 128   ;;  %s1359_s0 = smov 256  }
 0x384   : > { %s1360_s13 = smov 8  }
 0x385   : > { %985 = dma.vmem_to_hbm [thread:$0]  (%p1516_p9), %s825_s9, 256, %s827_s12, %s811_s21, %s1358_s27, %s1359_s0, %s1360_s13  }
 0x386 PF: > { %s1954_s11 = sld [smem:[#allocation11_spill]]  ;;  %p999_p7 = scmp.ge.s32.totalorder %s1351_s7, 2 }
 0x388   : > { %p995_p8 = pnand %p999_p7, %p1520_p1 }
 0x38a   : > { %p996_p3 = pneg %p995_p8 }
 0x38c   : > { %s841_s2 = sand.u32 1, %s1954_s11  }
 0x38d   : > { %s842_s28 = scalar_lea.sflag [#allocation4], %s841_s2 }
 0x38e   : > { %1306 = dma.done.wait (%p996_p3), %s842_s28, 256  }
 0x38f   : > { %1308 = vsyncadd (%p996_p3), %s842_s28, 4294967040  ;;  %s25_s7 = sadd.s32 1, %s1351_s7   ;;  %s1956_s5 = sld [smem:[#allocation14_spill]] }
 0x390   : > { %p22_p11 = scmp.ge.s32.totalorder %s25_s7, 6   ;;  %s1957_s9 = sld [smem:[#allocation15_spill]] }
 0x391   : > { %s1958_s21 = smov %s1315_s22  ;;  %s1959_s22 = smov %s1319_s23 }
 0x392   : > { %s1960_s23 = smov %s1533_s19  ;;  %s1961_s24 = smov %s1327_s25 }
 0x393   : > { %s1962_s25 = smov %s1331_s26  ;;  %s1963_s26 = smov %s1530_s18 }
 0x394   : > { %s1964_s27 = smov %s1343_s29  ;;  %s1965_s28 = smov %s1347_s30 }
 0x395   : > { %s1966_s29 = smov %s1956_s5  ;;  %24 = sbr.rel (!%p22_p11) target bundleno = 17 (0x11), region = 102 }
 0x396   : > { %s1967_s30 = smov %s1957_s9 }
 0x39a   :  { %848 = vsyncpa [#allocation3], 1 }
 0x39b   :  { %850 = vsyncpa [#allocation3 + $0x1], 1 }
 0x39c   :  { %851 = vsyncpa [#allocation6], 1 }
 0x39d   :  { %853 = vsyncpa [#allocation6 + $0x1], 1 }
 0x39e   :  { %854 = vsyncpa [#allocation4], 1 }
 0x39f   :  { %856 = vsyncpa [#allocation4 + $0x1], 1 }

</bundles_post_ra>
